<compile_context>
chip_gen: v7x
topology: tpu7x:2x2x1
jax: 0.10.0
libtpu: 0.0.40
codegen_flags: <defaults>
</compile_context>

<pallas_src>
import jax
import jax.numpy as jnp
from jax.experimental import pallas as pl
from jax.experimental.pallas import tpu as pltpu

MATMUL_DTYPE = jnp.bfloat16     # MXU input dtype (accumulation stays f32)
TILE_ROWS = 512                 # row tile for the pointwise-chain kernels
_GEM_EPS = 1e-6
_BN_EPS = 1e-5


def _round_up(n, m):
    return ((n + m - 1) // m) * m


# ---------------------------------------------------------------------------
# Pallas kernel 1: fused rowwise affine + chain of dense layers (no nonlin).
#   y = ((x * scale + shift) @ W1 + b1) @ W2 + b2 [... @ WL + bL]
# Covers conv3d_2, conv3d_3 (1x1x1 Conv3d / 1x1 Conv2d / ConvTranspose2d packed
# as a 256->1024 matmul) and the final fc.
# ---------------------------------------------------------------------------
def _make_chain_kernel(num_layers, matmul_dtype):
    def kernel(x_ref, scale_ref, shift_ref, *rest):
        o_ref = rest[-1]
        h = x_ref[...].astype(jnp.float32) * scale_ref[...] + shift_ref[...]
        for l in range(num_layers):
            w_ref = rest[2 * l]
            b_ref = rest[2 * l + 1]
            h = jnp.dot(h.astype(matmul_dtype), w_ref[...],
                        preferred_element_type=jnp.float32) + b_ref[...]
        o_ref[...] = h.astype(o_ref.dtype)
    return kernel


def pointwise_chain(x, scale, shift, layers, *, tile_rows=TILE_ROWS,
                    matmul_dtype=MATMUL_DTYPE):
    """Per-row affine followed by a chain of dense layers.

    x: (N, Cin) f32; scale/shift: (Cin,); layers: [(W (Ci, Co), b (Co,)), ...].
    Returns (N, Cout_last) f32.
    """
    n, cin = x.shape
    cout = layers[-1][0].shape[1]

    n_pad = _round_up(max(n, 8), 8)
    tn = min(tile_rows, n_pad)
    n_pad = _round_up(n_pad, tn)
    if n_pad != n:
        x = jnp.pad(x, ((0, n_pad - n), (0, 0)))

    args = [x,
            scale.reshape(1, cin).astype(jnp.float32),
            shift.reshape(1, cin).astype(jnp.float32)]
    in_specs = [
        pl.BlockSpec((tn, cin), lambda i: (i, 0)),          # pipelined row tiles
        pl.BlockSpec((1, cin), lambda i: (0, 0)),            # BN scale (resident)
        pl.BlockSpec((1, cin), lambda i: (0, 0)),            # BN shift (resident)
    ]
    flops = 2 * n_pad * cin
    bytes_accessed = n_pad * cin * x.dtype.itemsize + n_pad * cout * 4
    for (w, b) in layers:
        ci, co = w.shape
        args.append(w.astype(matmul_dtype))                  # weights DMA'd once
        args.append(b.reshape(1, co).astype(jnp.float32))
        in_specs.append(pl.BlockSpec((ci, co), lambda i: (0, 0)))
        in_specs.append(pl.BlockSpec((1, co), lambda i: (0, 0)))
        flops += 2 * n_pad * ci * co
        bytes_accessed += ci * co * jnp.dtype(matmul_dtype).itemsize + co * 4

    out = pl.pallas_call(
        _make_chain_kernel(len(layers), matmul_dtype),
        out_shape=jax.ShapeDtypeStruct((n_pad, cout), jnp.float32),
        grid=(n_pad // tn,),
        in_specs=in_specs,
        out_specs=pl.BlockSpec((tn, cout), lambda i: (i, 0)),  # lane-dense output
        compiler_params=pltpu.CompilerParams(
            dimension_semantics=("parallel",)),
        cost_estimate=pl.CostEstimate(flops=int(flops), transcendentals=0,
                                      bytes_accessed=int(bytes_accessed)),
    )(*args)
    return out[:n]


# ---------------------------------------------------------------------------
# Pallas kernel 2: fused (conv3d_3 + feature_map_2) add + GeM pooling.
#   g[b, c] = ( mean_s( clamp(fm+up, eps)^p ) )^(1/p)
# ---------------------------------------------------------------------------
def _gem_pool_kernel(p_ref, fm_ref, up_ref, o_ref):
    p = p_ref[0]                              # learnable GeM exponent (SMEM)
    x = fm_ref[0] + up_ref[0]                 # (S, C) f32
    x = jnp.maximum(x, _GEM_EPS)              # clamp(min=eps)
    xp = jnp.exp(p * jnp.log(x))              # .pow(p), general (non-integer) p
    m = jnp.mean(xp, axis=0, keepdims=True)   # avg_pool2d over full spatial
    o_ref[0] = jnp.exp(jnp.log(m) / p)        # .pow(1/p)


def gem_pool_add(fm2, up, p):
    """fm2, up: (B, S, C) f32. Returns GeM(fm2 + up): (B, C) f32."""
    b, s, c = fm2.shape
    p_arr = jnp.asarray(p, jnp.float32).reshape(1)
    out = pl.pallas_call(
        _gem_pool_kernel,
        out_shape=jax.ShapeDtypeStruct((b, 1, c), jnp.float32),
        grid=(b,),
        in_specs=[
            pl.BlockSpec(memory_space=pltpu.MemorySpace.SMEM),  # scalar p
            pl.BlockSpec((1, s, c), lambda i: (i, 0, 0)),
            pl.BlockSpec((1, s, c), lambda i: (i, 0, 0)),
        ],
        out_specs=pl.BlockSpec((1, 1, c), lambda i: (i, 0, 0)),
        compiler_params=pltpu.CompilerParams(
            dimension_semantics=("parallel",)),
    )(p_arr, fm2, up)
    return out[:, 0, :]


# ---------------------------------------------------------------------------
# Frozen r3d_18 backbone (stem, layer1, layer2, layer3) -- plain JAX.
# ---------------------------------------------------------------------------
def _conv3d(x, w, stride, padding):
    return jax.lax.conv_general_dilated(
        x, w, window_strides=stride, padding=padding,
        dimension_numbers=("NCDHW", "OIDHW", "NCDHW"))


def _bn5d(x, bn):
    g, b, m, v = bn
    s = g * jax.lax.rsqrt(v + _BN_EPS)
    t = b - m * s
    return x * s.reshape(1, -1, 1, 1, 1) + t.reshape(1, -1, 1, 1, 1)


def _basic_block(x, p):
    s = p["stride"]
    out = _conv3d(x, p["conv1_w"], (s, s, s), [(1, 1)] * 3)
    out = jax.nn.relu(_bn5d(out, p["bn1"]))
    out = _conv3d(out, p["conv2_w"], (1, 1, 1), [(1, 1)] * 3)
    out = _bn5d(out, p["bn2"])
    if "ds_w" in p:
        res = _bn5d(_conv3d(x, p["ds_w"], (s, s, s), [(0, 0)] * 3), p["ds_bn"])
    else:
        res = x
    return jax.nn.relu(out + res)


def encoder_forward(x, enc):
    x = _conv3d(x, enc["stem"]["w"], (1, 2, 2), [(1, 1), (3, 3), (3, 3)])
    x = jax.nn.relu(_bn5d(x, enc["stem"]["bn"]))
    for blk in enc["layer1"]:
        x = _basic_block(x, blk)
    for blk in enc["layer2"]:
        x = _basic_block(x, blk)
    x2 = x                                    # encoder[2] output (128 channels)
    for blk in enc["layer3"]:
        x = _basic_block(x, blk)
    return x2, x                              # encoder[3] output (256 channels)


# ---------------------------------------------------------------------------
# FPN head (Pallas path + pure-JAX f32 reference path).
# ---------------------------------------------------------------------------
def _bn_scale_shift(bn):
    g, b, m, v = bn
    s = g / jnp.sqrt(v + _BN_EPS)
    return s, b - m * s


def _chain_ref(x, scale, shift, layers):
    h = x * scale[None, :] + shift[None, :]
    for w, b in layers:
        h = h @ w + b[None, :]
    return h


def _gem_ref(fm2, up, p):
    x = jnp.maximum(fm2 + up, _GEM_EPS)
    m = jnp.mean(x ** p, axis=1)
    return m ** (1.0 / p)


def fpn_head(x2, x3, hp, *, use_pallas=True, matmul_dtype=MATMUL_DTYPE):
    b, c2, d2, h2, w2 = x2.shape
    _, c3, d3, h3, w3 = x3.shape
    # Rearrange('b c d h w -> b (d c) h w') feeding Conv2d(256, ...) requires d == 1.
    assert d2 == 1 and d3 == 1, "FPN head expects temporal depth 1 after layer2/3"
    s2, s3 = h2 * w2, h3 * w3
    co = 256

    if use_pallas:
        chain = lambda x, sc, sh, layers: pointwise_chain(
            x, sc, sh, layers, matmul_dtype=matmul_dtype)
    else:
        chain = _chain_ref

    # conv3d_2 branch: BN3d(128) -> Conv3d 1x1x1 (128->256) -> Conv2d 1x1 (256->256)
    x2_rows = jnp.transpose(x2[:, :, 0], (0, 2, 3, 1)).reshape(b * s2, c2)
    sc2, sh2 = _bn_scale_shift(hp["bn2"])
    fm2 = chain(x2_rows, sc2, sh2,
                [(hp["c2_w3d"], hp["c2_b3d"]), (hp["c2_w2d"], hp["c2_b2d"])])
    fm2 = fm2.reshape(b, s2, co)

    # conv3d_3 branch: BN3d(256) -> 1x1x1 -> 1x1 -> ConvTranspose2d(k=2, s=2).
    # The transposed conv is a per-pixel 256 -> (2*2*256) matmul; its 2x2 patches
    # are scattered onto the upsampled grid with a cheap reshape/transpose.
    x3_rows = jnp.transpose(x3[:, :, 0], (0, 2, 3, 1)).reshape(b * s3, c3)
    sc3, sh3 = _bn_scale_shift(hp["bn3"])
    up = chain(x3_rows, sc3, sh3,
               [(hp["c3_w3d"], hp["c3_b3d"]),
                (hp["c3_w2d"], hp["c3_b2d"]),
                (hp["c3_wt"], hp["c3_bt"])])
    up = up.reshape(b, h3, w3, 2, 2, co)
    up = jnp.transpose(up, (0, 1, 3, 2, 4, 5)).reshape(b, s2, co)

    # add + GeM pooling, then fc
    if use_pallas:
        g = gem_pool_add(fm2, up, hp["gem_p"])
    else:
        g = _gem_ref(fm2, up, hp["gem_p"])

    ones = jnp.ones((co,), jnp.float32)
    zeros = jnp.zeros((co,), jnp.float32)
    out = chain(g, ones, zeros, [(hp["fc_w"], hp["fc_b"])])
    return out


def fpn_forward(batch, enc_params, head_params):
    x = batch["images"]                          # (B, D, C, H, W)
    x = jnp.transpose(x, (0, 2, 1, 3, 4))        # Rearrange('b d c h w -> b c d h w')
    x2, x3 = encoder_forward(x, enc_params)
    out = fpn_head(x2, x3, head_params, use_pallas=True)
    return out, None


# ---------------------------------------------------------------------------
# Deterministic parameter init (random stand-ins for pretrained weights).
# ---------------------------------------------------------------------------
def _bn_params(c):
    return (jnp.ones((c,), jnp.float32), jnp.zeros((c,), jnp.float32),
            jnp.zeros((c,), jnp.float32), jnp.ones((c,), jnp.float32))


def init_encoder_params(key):
    keys = iter(jax.random.split(key, 16))

    def conv(o, i, k):
        fan_in = i * k[0] * k[1] * k[2]
        return jax.random.normal(next(keys), (o, i) + k, jnp.float32) * (2.0 / fan_in) ** 0.5

    def block(cin, cout, stride, downsample):
        p = {"stride": stride,
             "conv1_w": conv(cout, cin, (3, 3, 3)), "bn1": _bn_params(cout),
             "conv2_w": conv(cout, cout, (3, 3, 3)), "bn2": _bn_params(cout)}
        if downsample:
            p["ds_w"] = conv(cout, cin, (1, 1, 1))
            p["ds_bn"] = _bn_params(cout)
        return p

    return {
        "stem": {"w": conv(64, 3, (3, 7, 7)), "bn": _bn_params(64)},
        "layer1": [block(64, 64, 1, False), block(64, 64, 1, False)],
        "layer2": [block(64, 128, 2, True), block(128, 128, 1, False)],
        "layer3": [block(128, 256, 2, True), block(256, 256, 1, False)],
    }


def init_head_params(key):
    k = jax.random.split(key, 12)

    def u(kk, shape, fan_in):
        bound = 1.0 / (fan_in ** 0.5)
        return jax.random.uniform(kk, shape, jnp.float32, -bound, bound)

    hp = {}
    # conv3d_2 = BN3d(128), Conv3d(128,256,1), Rearrange, Conv2d(256,256,1)
    hp["bn2"] = _bn_params(128)
    hp["c2_w3d"] = u(k[0], (256, 128), 128).T           # stored (in, out) for x @ W
    hp["c2_b3d"] = u(k[1], (256,), 128)
    hp["c2_w2d"] = u(k[2], (256, 256), 256).T
    hp["c2_b2d"] = u(k[3], (256,), 256)
    # conv3d_3 = BN3d(256), Conv3d(256,256,1), Rearrange, Conv2d(256,256,1),
    #            ConvTranspose2d(256,256,k=2,s=2)
    hp["bn3"] = _bn_params(256)
    hp["c3_w3d"] = u(k[4], (256, 256), 256).T
    hp["c3_b3d"] = u(k[5], (256,), 256)
    hp["c3_w2d"] = u(k[6], (256, 256), 256).T
    hp["c3_b2d"] = u(k[7], (256,), 256)
    wt = u(k[8], (256, 256, 2, 2), 256 * 2 * 2)         # torch layout (in, out, kh, kw)
    hp["c3_wt"] = jnp.transpose(wt, (0, 2, 3, 1)).reshape(256, 4 * 256)
    bt = u(k[9], (256,), 256 * 2 * 2)
    hp["c3_bt"] = jnp.tile(bt, 4)                       # bias replicated per (kh, kw)
    # GeM (learnable scalar p, init 3.0)
    hp["gem_p"] = jnp.float32(3.0)
    # fc = Linear(256, 256)
    hp["fc_w"] = u(k[10], (256, 256), 256).T
    hp["fc_b"] = u(k[11], (256,), 256)
    return hp


if __name__ == "__main__":
    key = jax.random.PRNGKey(0)
    k_img, k_enc, k_head = jax.random.split(key, 3)

    # Shapes implied by the forward: x['images'] is (b, d, c, h, w); d=2 frames so
    # the temporal depth is 1 after layer2/layer3 (required by Rearrange + Conv2d).
    B, D, C, H, W = 2, 2, 3, 32, 32
    images = jax.random.normal(k_img, (B, D, C, H, W), jnp.float32)

    enc_params = init_encoder_params(k_enc)
    head_params = init_head_params(k_head)

    out, aux = fpn_forward({"images": images}, enc_params, head_params)
    out = jax.block_until_ready(out)
    assert aux is None
    assert out.shape == (B, 256)

    # Reference: identical math in plain JAX / f32 (kernel uses bf16 MXU inputs,
    # hence the relaxed tolerance).
    x = jnp.transpose(images, (0, 2, 1, 3, 4))
    x2, x3 = encoder_forward(x, enc_params)
    ref = fpn_head(x2, x3, head_params, use_pallas=False)
    err = float(jnp.max(jnp.abs(out - ref)))
    assert jnp.allclose(out, ref, atol=5e-2, rtol=5e-2), f"max abs err {err}"
    print("KERNEL_OK")
</pallas_src>

<mosaic_0001>
module attributes {stable_mosaic.version = 11 : i64} {
  func.func @kernel(%arg0: i32, %arg1: memref<128x128xf32, #tpu.memory_space<vmem>>, %arg2: memref<1x128xf32, #tpu.memory_space<vmem>>, %arg3: memref<1x128xf32, #tpu.memory_space<vmem>>, %arg4: memref<128x256xbf16, #tpu.memory_space<vmem>>, %arg5: memref<1x256xf32, #tpu.memory_space<vmem>>, %arg6: memref<256x256xbf16, #tpu.memory_space<vmem>>, %arg7: memref<1x256xf32, #tpu.memory_space<vmem>>, %arg8: memref<128x256xf32, #tpu.memory_space<vmem>>) attributes {dimension_semantics = [#tpu.dimension_semantics<parallel>], iteration_bounds = array<i64: 1>, scalar_prefetch = 0 : i64, scratch_operands = 0 : i64, tpu.core_type = #tpu.core_type<tc>, window_params = [{transform_indices = @transform_0, window_bounds = array<i64: 128, 128>}, {pipeline_mode = #tpu.pipeline_mode<synchronous>, transform_indices = @transform_1, window_bounds = array<i64: 1, 128>}, {pipeline_mode = #tpu.pipeline_mode<synchronous>, transform_indices = @transform_2, window_bounds = array<i64: 1, 128>}, {pipeline_mode = #tpu.pipeline_mode<synchronous>, transform_indices = @transform_3, window_bounds = array<i64: 128, 256>}, {pipeline_mode = #tpu.pipeline_mode<synchronous>, transform_indices = @transform_4, window_bounds = array<i64: 1, 256>}, {pipeline_mode = #tpu.pipeline_mode<synchronous>, transform_indices = @transform_5, window_bounds = array<i64: 256, 256>}, {pipeline_mode = #tpu.pipeline_mode<synchronous>, transform_indices = @transform_6, window_bounds = array<i64: 1, 256>}, {transform_indices = @transform_7, window_bounds = array<i64: 128, 256>}]} {
    %c0 = arith.constant 0 : index
    %c0_0 = arith.constant 0 : index
    %0 = vector.load %arg1[%c0, %c0_0] : memref<128x128xf32, #tpu.memory_space<vmem>>, vector<128x128xf32>
    %c0_1 = arith.constant 0 : index
    %c0_2 = arith.constant 0 : index
    %1 = vector.load %arg2[%c0_1, %c0_2] : memref<1x128xf32, #tpu.memory_space<vmem>>, vector<1x128xf32>
    %2 = vector.broadcast %1 : vector<1x128xf32> to vector<128x128xf32>
    %3 = arith.mulf %0, %2 : vector<128x128xf32>
    %c0_3 = arith.constant 0 : index
    %c0_4 = arith.constant 0 : index
    %4 = vector.load %arg3[%c0_3, %c0_4] : memref<1x128xf32, #tpu.memory_space<vmem>>, vector<1x128xf32>
    %5 = vector.broadcast %4 : vector<1x128xf32> to vector<128x128xf32>
    %6 = arith.addf %3, %5 : vector<128x128xf32>
    %7 = arith.truncf %6 : vector<128x128xf32> to vector<128x128xbf16>
    %c0_5 = arith.constant 0 : index
    %c0_6 = arith.constant 0 : index
    %8 = vector.load %arg4[%c0_5, %c0_6] : memref<128x256xbf16, #tpu.memory_space<vmem>>, vector<128x256xbf16>
    %cst = arith.constant dense<0.000000e+00> : vector<128x256xf32>
    %9 = tpu.matmul %7, %8, %cst {dimension_numbers = #tpu.dot_dimension_numbers<[1], [0], [0], [1], [0, 0, 1, 1], [], []>} : vector<128x128xbf16>, vector<128x256xbf16>, vector<128x256xf32> -> vector<128x256xf32>
    %c0_7 = arith.constant 0 : index
    %c0_8 = arith.constant 0 : index
    %10 = vector.load %arg5[%c0_7, %c0_8] : memref<1x256xf32, #tpu.memory_space<vmem>>, vector<1x256xf32>
    %11 = vector.broadcast %10 : vector<1x256xf32> to vector<128x256xf32>
    %12 = arith.addf %9, %11 : vector<128x256xf32>
    %13 = arith.truncf %12 : vector<128x256xf32> to vector<128x256xbf16>
    %c0_9 = arith.constant 0 : index
    %c0_10 = arith.constant 0 : index
    %14 = vector.load %arg6[%c0_9, %c0_10] : memref<256x256xbf16, #tpu.memory_space<vmem>>, vector<256x256xbf16>
    %cst_11 = arith.constant dense<0.000000e+00> : vector<128x256xf32>
    %15 = tpu.matmul %13, %14, %cst_11 {dimension_numbers = #tpu.dot_dimension_numbers<[1], [0], [0], [1], [0, 0, 1, 1], [], []>} : vector<128x256xbf16>, vector<256x256xbf16>, vector<128x256xf32> -> vector<128x256xf32>
    %c0_12 = arith.constant 0 : index
    %c0_13 = arith.constant 0 : index
    %16 = vector.load %arg7[%c0_12, %c0_13] : memref<1x256xf32, #tpu.memory_space<vmem>>, vector<1x256xf32>
    %17 = vector.broadcast %16 : vector<1x256xf32> to vector<128x256xf32>
    %18 = arith.addf %15, %17 : vector<128x256xf32>
    %c0_14 = arith.constant 0 : index
    %c0_15 = arith.constant 0 : index
    %19 = vector.load %arg8[%c0_14, %c0_15] : memref<128x256xf32, #tpu.memory_space<vmem>>, vector<128x256xf32>
    tpu.vector_store %arg8[%c0_14, %c0_15], %18 {strides = array<i32>} : memref<128x256xf32, #tpu.memory_space<vmem>>, vector<128x256xf32>,
    return
  }
  func.func @transform_0(%arg0: i32) -> (i32, i32) {
    %c0_i32 = arith.constant 0 : i32
    %c0_i32_0 = arith.constant 0 : i32
    return %arg0, %c0_i32 : i32, i32
  }
  func.func @transform_1(%arg0: i32) -> (i32, i32) {
    %c0_i32 = arith.constant 0 : i32
    %c0_i32_0 = arith.constant 0 : i32
    %c0_i32_1 = arith.constant 0 : i32
    return %c0_i32, %c0_i32_0 : i32, i32
  }
  func.func @transform_2(%arg0: i32) -> (i32, i32) {
    %c0_i32 = arith.constant 0 : i32
    %c0_i32_0 = arith.constant 0 : i32
    %c0_i32_1 = arith.constant 0 : i32
    return %c0_i32, %c0_i32_0 : i32, i32
  }
  func.func @transform_3(%arg0: i32) -> (i32, i32) {
    %c0_i32 = arith.constant 0 : i32
    %c0_i32_0 = arith.constant 0 : i32
    %c0_i32_1 = arith.constant 0 : i32
    return %c0_i32, %c0_i32_0 : i32, i32
  }
  func.func @transform_4(%arg0: i32) -> (i32, i32) {
    %c0_i32 = arith.constant 0 : i32
    %c0_i32_0 = arith.constant 0 : i32
    %c0_i32_1 = arith.constant 0 : i32
    return %c0_i32, %c0_i32_0 : i32, i32
  }
  func.func @transform_5(%arg0: i32) -> (i32, i32) {
    %c0_i32 = arith.constant 0 : i32
    %c0_i32_0 = arith.constant 0 : i32
    %c0_i32_1 = arith.constant 0 : i32
    return %c0_i32, %c0_i32_0 : i32, i32
  }
  func.func @transform_6(%arg0: i32) -> (i32, i32) {
    %c0_i32 = arith.constant 0 : i32
    %c0_i32_0 = arith.constant 0 : i32
    %c0_i32_1 = arith.constant 0 : i32
    return %c0_i32, %c0_i32_0 : i32, i32
  }
  func.func @transform_7(%arg0: i32) -> (i32, i32) {
    %c0_i32 = arith.constant 0 : i32
    %c0_i32_0 = arith.constant 0 : i32
    return %arg0, %c0_i32 : i32, i32
  }
}

</mosaic_0001>

<bundles_post_ra>
// kernel: tpu_custom_call.1
= control target key start
LH: loop header
LB: loop body
LE: loop exit
PB: predicated region body
PF: predicated region fallthrough
CT: control target
= control target key end

     0   :  { %12 = vsyncpa [#allocation3], 0  ;;  %s1253_s0 = inlined_call_operand.hbm [shape: f32[128,128], index: 0, kind: input, shape index: {}]   ;;  %s1254_s1 = inlined_call_operand.vmem [shape: f32[1,128], index: 1, kind: input, shape index: {}]   ;;  %s1255_s2 = inlined_call_operand.vmem [shape: f32[1,128], index: 2, kind: input, shape index: {}]   ;;  %s1256_s3 = inlined_call_operand.hbm [shape: bf16[128,256], index: 3, kind: input, shape index: {}]   ;;  %s1257_s4 = inlined_call_operand.vmem [shape: f32[1,256], index: 4, kind: input, shape index: {}]   ;;  %s1258_s5 = inlined_call_operand.hbm [shape: bf16[256,256], index: 5, kind: input, shape index: {}]   ;;  %s1259_s6 = inlined_call_operand.vmem [shape: f32[1,256], index: 6, kind: input, shape index: {}]   ;;  %s1260_s7 = inlined_call_operand.hbm [shape: f32[128,256], index: 7, kind: output, shape index: {}]  }
   0x1   :  { %13 = vsyncpa [#allocation6], 0 }
   0x2   :  { %14 = vsyncpa [#allocation4], 0  ;;  %s1000_s24 = smov [#allocation5]   ;;  %s1001_s26 = smov [#allocation2]  }
   0x3   :  { %s36_s25 = sshll.u32 %s1000_s24, 4  ;;  %s20_s27 = sshll.u32 %s1001_s26, 4  ;;  %s37_s25 = int_to_ptr.vmem [resolvable:$true] %s36_s25  ;;  %s1049_s27 = int_to_ptr.vmem [resolvable:$true] %s20_s27 }
   0x4   :  { %s906_s30 = scalar_lea.hbm %s1256_s3, 2048 }
   0x5   :  { %p907_p0 = scmp.ne.s32.totalorder %s1256_s3, %s906_s30  ;;  %p910_p1 = scmp.lt.u32.totalorder %s906_s30, %s1256_s3 }
   0x7   :  { %p912_p2 = pnand %p910_p1, %p907_p0 }
   0x9   :  { %915 = shalt.err (!%p912_p2)
}
   0xa   :  { %s916_s12 = scalar_lea.vmem %s37_s25, 2048  ;;  %p921_p4 = scmp.lt.s32.totalorder %s37_s25, %s37_s25 }
   0xb   :  { %p917_p3 = scmp.ne.s32.totalorder %s37_s25, %s916_s12  ;;  %p922_p5 = scmp.lt.s32.totalorder %s916_s12, %s916_s12 }
   0xd   :  { %p923_p6 = por %p922_p5, %p921_p4 }
   0xf   :  { %p924_p7 = pnand %p923_p6, %p917_p3 }
  0x11   :  { %927 = shalt.err (!%p924_p7)
}
  0x12   :  { %s1002_s13 = smov 128   ;;  %s1003_s14 = smov 8  }
  0x13   :  { %42 = dma.hbm_to_vmem [thread:$0]  %s1256_s3, 2048, %s37_s25, [#allocation6], %s1002_s13, %s1002_s13, %s1003_s14  }
  0x14   :  { %s928_s19 = scalar_lea.hbm %s1253_s0, 2048 }
  0x15   :  { %p929_p8 = scmp.ne.s32.totalorder %s1253_s0, %s928_s19  ;;  %p932_p9 = scmp.lt.u32.totalorder %s928_s19, %s1253_s0 }
  0x17   :  { %p934_p10 = pnand %p932_p9, %p929_p8 }
  0x19   :  { %937 = shalt.err (!%p934_p10)
}
  0x1a   :  { %s938_s24 = scalar_lea.vmem %s1049_s27, 2048  ;;  %p943_p12 = scmp.lt.s32.totalorder %s1049_s27, %s1049_s27 }
  0x1b   :  { %p939_p11 = scmp.ne.s32.totalorder %s1049_s27, %s938_s24  ;;  %p944_p13 = scmp.lt.s32.totalorder %s938_s24, %s938_s24 }
  0x1d   :  { %p945_p0 = por %p944_p13, %p943_p12 }
  0x1f   :  { %p946_p1 = pnand %p945_p0, %p939_p11 }
  0x21   :  { %949 = shalt.err (!%p946_p1)
}
  0x22   :  { %26 = dma.hbm_to_vmem [thread:$0]  %s1253_s0, 2048, %s1049_s27, [#allocation3], %s1002_s13, %s1002_s13, %s1003_s14  }
  0x23   :  { %s1004_s26 = smov [#allocation7]   ;;  %s950_s8 = scalar_lea.hbm %s1258_s5, 4096 }
  0x24   :  { %s50_s28 = sshll.u32 %s1004_s26, 4  ;;  %p951_p2 = scmp.ne.s32.totalorder %s1258_s5, %s950_s8  ;;  %s51_s28 = int_to_ptr.vmem [resolvable:$true] %s50_s28 }
  0x25   :  { %p954_p3 = scmp.lt.u32.totalorder %s950_s8, %s1258_s5 }
  0x27   :  { %p956_p4 = pnand %p954_p3, %p951_p2 }
  0x29   :  { %959 = shalt.err (!%p956_p4)
}
  0x2a   :  { %s960_s15 = scalar_lea.vmem %s51_s28, 4096  ;;  %p965_p6 = scmp.lt.s32.totalorder %s51_s28, %s51_s28 }
  0x2b   :  { %p961_p5 = scmp.ne.s32.totalorder %s51_s28, %s960_s15  ;;  %p966_p7 = scmp.lt.s32.totalorder %s960_s15, %s960_s15 }
  0x2d   :  { %p967_p8 = por %p966_p7, %p965_p6 }
  0x2f   :  { %p968_p9 = pnand %p967_p8, %p961_p5 }
  0x31   :  { %971 = shalt.err (!%p968_p9)
}
  0x32   :  { %56 = dma.hbm_to_vmem [thread:$0]  %s1258_s5, 4096, %s51_s28, [#allocation6], %s1002_s13, %s1002_s13, %s1003_s14  }
  0x33   :  { %994 = dma.done.wait [#allocation3], 2048  }
  0x34   :  { %995 = vsyncadd [#allocation3], 4294965248 }
  0x35   :  { %996 = dma.done.wait [#allocation6], 6144  }
  0x36   :  { %997 = vsyncadd [#allocation6], 4294961152  ;;  %v1005_v0 = vmov 0   ;;  %v834_v1 = vld [vmem:[#allocation5 + $0x4] ss:$8 sps:$4 sm:$0xff]   ;;  %v71_v30 = vld [vmem:[#allocation2 + $0x10] sm:$0xff] }
  0x37   :  { %279 = vmatprep.mubr.bf16.mxu0 %v1005_v0  ;;  %v836_v2 = vld [vmem:[#allocation5] ss:$8 sps:$4 sm:$0xff]   ;;  %247 = vmatprep.subr.bf16.mxu0 %v834_v1  ;;  %v837_v3 = vld [vmem:[#allocation5 + $0x14] ss:$8 sps:$4 sm:$0xff]   ;;  %v839_v4 = vld [vmem:[#allocation5 + $0x10] ss:$8 sps:$4 sm:$0xff]  }
  0x38   :  { %248 = vmatpush1.bf16.msra.mxu0 %v836_v2  ;;  %v840_v5 = vld [vmem:[#allocation5 + $0x24] ss:$8 sps:$4 sm:$0xff]   ;;  %v842_v6 = vld [vmem:[#allocation5 + $0x20] ss:$8 sps:$4 sm:$0xff]   ;;  %v843_v7 = vld [vmem:[#allocation5 + $0x34] ss:$8 sps:$4 sm:$0xff]  }
  0x39   :  { %249 = vmatprep.subr.bf16.mxu0 %v837_v3  ;;  %v845_v8 = vld [vmem:[#allocation5 + $0x30] ss:$8 sps:$4 sm:$0xff]   ;;  %v846_v9 = vld [vmem:[#allocation5 + $0x44] ss:$8 sps:$4 sm:$0xff]   ;;  %v848_v10 = vld [vmem:[#allocation5 + $0x40] ss:$8 sps:$4 sm:$0xff]  }
  0x3a   :  { %v849_v11 = vld [vmem:[#allocation5 + $0x54] ss:$8 sps:$4 sm:$0xff]   ;;  %v851_v12 = vld [vmem:[#allocation5 + $0x50] ss:$8 sps:$4 sm:$0xff]   ;;  %v69_v13 = vld [vmem:[#allocation2] sm:$0xff] }
  0x3b   :  { %v70_v14 = vld [vmem:[#allocation2 + $0x8] sm:$0xff]  ;;  %v1105_v15 = vld [vmem:[%s1254_s1] ss:$0 sm:$0xff]  ;;  %v863_v19 = vld [vmem:[#allocation7 + $0x14] ss:$8 sps:$4 sm:$0xff]  }
  0x3c   :  { %250 = vmatpush1.bf16.msra.mxu0 %v839_v4  ;;  %v860_v16 = vld [vmem:[#allocation7 + $0x4] ss:$8 sps:$4 sm:$0xff]   ;;  %v858_v18 = vld [vmem:[#allocation7] ss:$8 sps:$4 sm:$0xff]   ;;  %v92_v21 = vmul.f32 %v1105_v15, %v69_v13  ;;  %v93_v22 = vmul.f32 %v1105_v15, %v70_v14  ;;  %v855_v24 = vld [vmem:[#allocation5 + $0x74] ss:$8 sps:$4 sm:$0xff]   ;;  %v94_v35 = vmul.f32 %v1105_v15, %v71_v30 }
  0x3d   :  { %251 = vmatprep.subr.bf16.mxu0 %v840_v5  ;;  %v852_v17 = vld [vmem:[#allocation5 + $0x64] ss:$8 sps:$4 sm:$0xff]   ;;  %793 = vmatprep.subr.bf16.mxu1 %v860_v16  ;;  %v854_v20 = vld [vmem:[#allocation5 + $0x60] ss:$8 sps:$4 sm:$0xff]   ;;  %v861_v25 = vld [vmem:[#allocation7 + $0x10] ss:$8 sps:$4 sm:$0xff]  }
  0x3e   :  { %809 = vmatpush1.bf16.msra.mxu1 %v858_v18  ;;  %v1112_v23 = vld [vmem:[%s1255_s2] ss:$0 sm:$0xff]  ;;  %v857_v26 = vld [vmem:[#allocation5 + $0x70] ss:$8 sps:$4 sm:$0xff]   ;;  %v866_v27 = vld [vmem:[#allocation7 + $0x24] ss:$8 sps:$4 sm:$0xff]  }
  0x3f   :  { %794 = vmatprep.subr.bf16.mxu1 %v863_v19  ;;  %v115_v28 = vadd.f32 %v1112_v23, %v92_v21  ;;  %v116_v29 = vadd.f32 %v1112_v23, %v93_v22  ;;  %v72_v31 = vld [vmem:[#allocation2 + $0x18] sm:$0xff]  ;;  %v864_v32 = vld [vmem:[#allocation7 + $0x20] ss:$8 sps:$4 sm:$0xff]   ;;  %v117_v39 = vadd.f32 %v1112_v23, %v94_v35  ;;  %v872_v41 = vld [vmem:[#allocation7 + $0x44] ss:$8 sps:$4 sm:$0xff]  }
  0x40   :  { %252 = vmatpush1.bf16.msra.mxu0 %v842_v6  ;;  %v869_v33 = vld [vmem:[#allocation7 + $0x34] ss:$8 sps:$4 sm:$0xff]   ;;  %v95_v36 = vmul.f32 %v1105_v15, %v72_v31  ;;  %v867_v37 = vld [vmem:[#allocation7 + $0x30] ss:$8 sps:$4 sm:$0xff]   ;;  %v73_v38 = vld [vmem:[#allocation2 + $0x20] sm:$0xff] }
  0x41   :  { %253 = vmatprep.subr.bf16.mxu0 %v843_v7  ;;  %v131_v34 = vpack.c.bf16 %v116_v29, %v115_v28  ;;  %v74_v42 = vld [vmem:[#allocation2 + $0x28] sm:$0xff]  ;;  %v875_v44 = vld [vmem:[#allocation7 + $0x54] ss:$8 sps:$4 sm:$0xff]   ;;  %v96_v46 = vmul.f32 %v1105_v15, %v73_v38  ;;  %v873_v48 = vld [vmem:[#allocation7 + $0x50] ss:$8 sps:$4 sm:$0xff]  }
  0x42   :  { %810 = vmatpush1.bf16.msra.mxu1 %v861_v25  ;;  %v118_v40 = vadd.f32 %v1112_v23, %v95_v36  ;;  %v870_v43 = vld [vmem:[#allocation7 + $0x40] ss:$8 sps:$4 sm:$0xff]   ;;  %v97_v47 = vmul.f32 %v1105_v15, %v74_v42  ;;  %v878_v51 = vld [vmem:[#allocation7 + $0x64] ss:$8 sps:$4 sm:$0xff]   ;;  %v75_v52 = vld [vmem:[#allocation2 + $0x30] sm:$0xff] }
  0x43   :  { %795 = vmatprep.subr.bf16.mxu1 %v866_v27  ;;  %v119_v49 = vadd.f32 %v1112_v23, %v96_v46  ;;  %v76_v53 = vld [vmem:[#allocation2 + $0x38] sm:$0xff]  ;;  %v876_v54 = vld [vmem:[#allocation7 + $0x60] ss:$8 sps:$4 sm:$0xff]   ;;  %v98_v57 = vmul.f32 %v1105_v15, %v75_v52  ;;  %v884_v62 = vld [vmem:[#allocation7 + $0x84] ss:$8 sps:$4 sm:$0xff]  }
  0x44   :  { %254 = vmatpush1.bf16.msra.mxu0 %v845_v8  ;;  %v132_v45 = vpack.c.bf16 %v118_v40, %v117_v39  ;;  %v120_v50 = vadd.f32 %v1112_v23, %v97_v47  ;;  %v881_v55 = vld [vmem:[#allocation7 + $0x74] ss:$8 sps:$4 sm:$0xff]   ;;  %v99_v58 = vmul.f32 %v1105_v15, %v76_v53  ;;  %v879_v59 = vld [vmem:[#allocation7 + $0x70] ss:$8 sps:$4 sm:$0xff]   ;;  %v77_v63 = vld [vmem:[#allocation2 + $0x40] sm:$0xff] }
  0x45   :  { %255 = vmatprep.subr.bf16.mxu0 %v846_v9  ;;  %v121_v60 = vadd.f32 %v1112_v23, %v98_v57  ;;  %v78_v1 = vld [vmem:[#allocation2 + $0x48] sm:$0xff]  ;;  %v887_v3 = vld [vmem:[#allocation7 + $0x94] ss:$8 sps:$4 sm:$0xff]   ;;  %v100_v5 = vmul.f32 %v1105_v15, %v77_v63  ;;  %v885_v7 = vld [vmem:[#allocation7 + $0x90] ss:$8 sps:$4 sm:$0xff]  }
  0x46   :  { %811 = vmatpush1.bf16.msra.mxu1 %v864_v32  ;;  %v133_v56 = vpack.c.bf16 %v120_v50, %v119_v49  ;;  %v122_v61 = vadd.f32 %v1112_v23, %v99_v58  ;;  %v882_v2 = vld [vmem:[#allocation7 + $0x80] ss:$8 sps:$4 sm:$0xff]   ;;  %v101_v6 = vmul.f32 %v1105_v15, %v78_v1  ;;  %v893_v14 = vld [vmem:[#allocation7 + $0xb4] ss:$8 sps:$4 sm:$0xff]   ;;  %v896_v22 = vld [vmem:[#allocation7 + $0xc4] ss:$8 sps:$4 sm:$0xff]  }
  0x47   :  { %796 = vmatprep.subr.bf16.mxu1 %v869_v33  ;;  %v123_v8 = vadd.f32 %v1112_v23, %v100_v5  ;;  %v888_v13 = vld [vmem:[#allocation7 + $0xa0] ss:$8 sps:$4 sm:$0xff]   ;;  %v897_v31 = vld [vmem:[#allocation7 + $0xd0] ss:$8 sps:$4 sm:$0xff]   ;;  %v902_v42 = vld [vmem:[#allocation7 + $0xe4] ss:$8 sps:$4 sm:$0xff]  }
  0x48   :  { %256 = vmatpush1.bf16.msra.mxu0 %v848_v10  ;;  %v134_v4 = vpack.c.bf16 %v122_v61, %v121_v60  ;;  %v124_v9 = vadd.f32 %v1112_v23, %v101_v6  ;;  %v890_v10 = vld [vmem:[#allocation7 + $0xa4] ss:$8 sps:$4 sm:$0xff]   ;;  %v84_v35 = vld [vmem:[#allocation2 + $0x78] sm:$0xff]  ;;  %v155_v46 = vld [vmem:[%s1257_s4] sm:$0x3] }
  0x49   :  { %257 = vmatprep.subr.bf16.mxu0 %v849_v11  ;;  %v79_v11 = vld [vmem:[#allocation2 + $0x50] sm:$0xff]  ;;  %v107_v38 = vmul.f32 %v1105_v15, %v84_v35 }
  0x4a   :  { %812 = vmatpush1.bf16.msra.mxu1 %v867_v37 }
  0x4b   :  { %797 = vmatprep.subr.bf16.mxu1 %v872_v41  ;;  %v130_v40 = vadd.f32 %v1112_v23, %v107_v38 }
  0x4c   :  { %258 = vmatpush1.bf16.msra.mxu0 %v851_v12  ;;  %v80_v12 = vld [vmem:[#allocation2 + $0x58] sm:$0xff] }
  0x4d   :  { %259 = vmatprep.subr.bf16.mxu0 %v852_v17  ;;  %v102_v17 = vmul.f32 %v1105_v15, %v79_v11 }
  0x4e   :  { %813 = vmatpush1.bf16.msra.mxu1 %v870_v43 }
  0x4f   :  { %798 = vmatprep.subr.bf16.mxu1 %v875_v44 }
  0x50   :  { %260 = vmatpush1.bf16.msra.mxu0 %v854_v20  ;;  %v125_v20 = vadd.f32 %v1112_v23, %v102_v17 }
  0x51   :  { %261 = vmatprep.subr.bf16.mxu0 %v855_v24  ;;  %v81_v24 = vld [vmem:[#allocation2 + $0x60] sm:$0xff] }
  0x52   :  { %814 = vmatpush1.bf16.msra.mxu1 %v873_v48  ;;  %v104_v29 = vmul.f32 %v1105_v15, %v81_v24 }
  0x53   :  { %799 = vmatprep.subr.bf16.mxu1 %v878_v51 }
  0x54   :  { %262 = vmatpush1.bf16.msra.mxu0 %v857_v26  ;;  %v894_v26 = vld [vmem:[#allocation7 + $0xc0] ss:$8 sps:$4 sm:$0xff]  }
  0x55   :  { %580 = vmatprep.subr.bf16.mxu0 %v860_v16  ;;  %v135_v16 = vpack.c.bf16 %v124_v9, %v123_v8 }
  0x56   :  { %815 = vmatpush1.bf16.msra.mxu1 %v876_v54 }
  0x57   :  { %280 = vmatmul.mubr.bf16.vlgmr.msra.gmra.mrb[0].mxu0 %v131_v34  ;;  %800 = vmatprep.subr.bf16.mxu1 %v881_v55  ;;  %v83_v34 = vld [vmem:[#allocation2 + $0x70] sm:$0xff] }
  0x58   :  { %289 = vmatprep.mubr.bf16.mxu0 %v1005_v0  ;;  %581 = vmatpush1.bf16.msra.mxu0 %v858_v18  ;;  %v103_v18 = vmul.f32 %v1105_v15, %v80_v12 }
  0x59   :  { %582 = vmatprep.subr.bf16.mxu0 %v863_v19  ;;  %v891_v19 = vld [vmem:[#allocation7 + $0xb0] ss:$8 sps:$4 sm:$0xff]  }
  0x5a   :  { %816 = vmatpush1.bf16.msra.mxu1 %v879_v59  ;;  %v126_v21 = vadd.f32 %v1112_v23, %v103_v18 }
  0x5b   :  { %801 = vmatprep.subr.bf16.mxu1 %v884_v62 }
  0x5c   :  { %583 = vmatpush1.bf16.msra.mxu0 %v861_v25  ;;  %v82_v25 = vld [vmem:[#allocation2 + $0x68] sm:$0xff]  ;;  %v136_v28 = vpack.c.bf16 %v126_v21, %v125_v20 }
  0x5d   :  { %584 = vmatprep.subr.bf16.mxu0 %v866_v27  ;;  %v899_v27 = vld [vmem:[#allocation7 + $0xd4] ss:$8 sps:$4 sm:$0xff]   ;;  %v105_v30 = vmul.f32 %v1105_v15, %v82_v25 }
  0x5e   :  { %817 = vmatpush1.bf16.msra.mxu1 %v882_v2 }
  0x5f   :  { %290 = vmatmul.mubr.bf16.gmra.mrb[4].mxu0 %v132_v45  ;;  %802 = vmatprep.subr.bf16.mxu1 %v887_v3 }
  0x60   :  { %299 = vmatprep.mubr.bf16.mxu0 %v1005_v0  ;;  %585 = vmatpush1.bf16.msra.mxu0 %v864_v32  ;;  %v127_v32 = vadd.f32 %v1112_v23, %v104_v29 }
  0x61   :  { %586 = vmatprep.subr.bf16.mxu0 %v869_v33  ;;  %v128_v33 = vadd.f32 %v1112_v23, %v105_v30 }
  0x62   :  { %818 = vmatpush1.bf16.msra.mxu1 %v885_v7 }
  0x63   :  { %803 = vmatprep.subr.bf16.mxu1 %v890_v10  ;;  %v137_v36 = vpack.c.bf16 %v128_v33, %v127_v32 }
  0x64   :  { %587 = vmatpush1.bf16.msra.mxu0 %v867_v37  ;;  %v106_v37 = vmul.f32 %v1105_v15, %v83_v34  ;;  %v905_v15 = vld [vmem:[#allocation7 + $0xf4] ss:$8 sps:$4 sm:$0xff]  }
  0x65   :  { %588 = vmatprep.subr.bf16.mxu0 %v872_v41 }
  0x66   :  { %819 = vmatpush1.bf16.msra.mxu1 %v888_v13  ;;  %v129_v39 = vadd.f32 %v1112_v23, %v106_v37  ;;  %v157_v23 = vlaneseq }
  0x67   :  { %300 = vmatmul.mubr.bf16.gmra.mrb[8].mxu0 %v133_v56  ;;  %804 = vmatprep.subr.bf16.mxu1 %v893_v14 }
  0x68   :  { %309 = vmatprep.mubr.bf16.mxu0 %v1005_v0  ;;  %589 = vmatpush1.bf16.msra.mxu0 %v870_v43  ;;  %v138_v41 = vpack.c.bf16 %v130_v40, %v129_v39  ;;  %v900_v43 = vld [vmem:[#allocation7 + $0xe0] ss:$8 sps:$4 sm:$0xff]   ;;  %v1151_v45 = vshrl.u32 %v157_v23, 7 }
  0x69   :  { %590 = vmatprep.subr.bf16.mxu0 %v875_v44  ;;  %v903_v44 = vld [vmem:[#allocation7 + $0xf0] ss:$8 sps:$4 sm:$0xff]  }
  0x6a   :  { %820 = vmatpush1.bf16.msra.mxu1 %v891_v19  ;;  %v163_v47 = vsub.s32 1, %v1151_v45 }
  0x6b   :  { %805 = vmatprep.subr.bf16.mxu1 %v896_v22 }
  0x6c   :  { %591 = vmatpush1.bf16.msra.mxu0 %v873_v48  ;;  %v1164_v50 = vrot.slane %v155_v46, %v163_v47 }
  0x6d   :  { %592 = vmatprep.subr.bf16.mxu0 %v878_v51 }
  0x6e   :  { %821 = vmatpush1.bf16.msra.mxu1 %v894_v26 }
  0x6f   :  { %310 = vmatmul.mubr.bf16.gmra.mrb[12].mxu0 %v134_v4  ;;  %806 = vmatprep.subr.bf16.mxu1 %v899_v27 }
  0x70   :  { %319 = vmatprep.mubr.bf16.mxu0 %v1005_v0  ;;  %593 = vmatpush1.bf16.msra.mxu0 %v876_v54 }
  0x71   :  { %594 = vmatprep.subr.bf16.mxu0 %v881_v55 }
  0x72   :  { %822 = vmatpush1.bf16.msra.mxu1 %v897_v31 }
  0x73   :  { %807 = vmatprep.subr.bf16.mxu1 %v902_v42 }
  0x74   :  { %595 = vmatpush1.bf16.msra.mxu0 %v879_v59 }
  0x75   :  { %596 = vmatprep.subr.bf16.mxu0 %v884_v62 }
  0x76   :  { %823 = vmatpush1.bf16.msra.mxu1 %v900_v43 }
  0x77   :  { %320 = vmatmul.mubr.bf16.gmra.mrb[16].mxu0 %v135_v16  ;;  %808 = vmatprep.subr.bf16.mxu1 %v905_v15 }
  0x78   :  { %329 = vmatprep.mubr.bf16.mxu0 %v1005_v0  ;;  %597 = vmatpush1.bf16.msra.mxu0 %v882_v2 }
  0x79   :  { %598 = vmatprep.subr.bf16.mxu0 %v887_v3 }
  0x7a   :  { %824 = vmatpush1.bf16.msra.mxu1 %v903_v44 }
  0x7c   :  { %599 = vmatpush1.bf16.msra.mxu0 %v885_v7 }
  0x7d   :  { %600 = vmatprep.subr.bf16.mxu0 %v890_v10 }
  0x7f   :  { %330 = vmatmul.mubr.bf16.gmra.mrb[20].mxu0 %v136_v28 }
  0x80   :  { %339 = vmatprep.mubr.bf16.mxu0 %v1005_v0  ;;  %601 = vmatpush1.bf16.msra.mxu0 %v888_v13 }
  0x81   :  { %602 = vmatprep.subr.bf16.mxu0 %v893_v14 }
  0x84   :  { %603 = vmatpush1.bf16.msra.mxu0 %v891_v19 }
  0x85   :  { %604 = vmatprep.subr.bf16.mxu0 %v896_v22 }
  0x87   :  { %340 = vmatmul.mubr.bf16.gmra.mrb[24].mxu0 %v137_v36 }
  0x88   :  { %349 = vmatprep.mubr.bf16.mxu0 %v1005_v0  ;;  %605 = vmatpush1.bf16.msra.mxu0 %v894_v26  ;;  %v159_v0 = vsub.s32 0, %v1151_v45 }
  0x89   :  { %606 = vmatprep.subr.bf16.mxu0 %v899_v27 }
  0x8a   :  { %v1160_v48 = vrot.slane %v155_v46, %v159_v0 }
  0x8c   :  { %607 = vmatpush1.bf16.msra.mxu0 %v897_v31 }
  0x8d   :  { %608 = vmatprep.subr.bf16.mxu0 %v902_v42 }
  0x8f   :  { %350 = vmatmul.mubr.bf16.gmra.mrb[28].mxu0 %v138_v41 }
  0x90   :  { %609 = vmatpush1.bf16.msra.mxu0 %v900_v43 }
  0x91   :  { %610 = vmatprep.subr.bf16.mxu0 %v905_v15 }
  0x94   :  { %611 = vmatpush1.bf16.msra.mxu0 %v903_v44 }
 0x12a   :  { %v281_v49 = vpop.f32.mrb[0].mxu0 }
 0x12b   :  { %v283_v51 = vpop.f32.mrb[1].mxu0  ;;  %v282_v53 = vadd.f32 %v281_v49, %v1160_v48 }
 0x12c   :  { %v285_v52 = vpop.f32.mrb[2].mxu0  ;;  %v284_v56 = vadd.f32 %v283_v51, %v1164_v50 }
 0x12d   :  { %v286_v54 = vadd.f32 %v285_v52, %v1160_v48  ;;  %v287_v55 = vpop.f32.mrb[3].mxu0 }
 0x12e   :  { %v288_v57 = vadd.f32 %v287_v55, %v1164_v50 }
 0x12f   :  { %v360_v58 = vpack.c.bf16 %v286_v54, %v282_v53 }
 0x130   :  { %v361_v59 = vpack.c.bf16 %v288_v57, %v284_v56 }
 0x132   :  { %v291_v60 = vpop.f32.mrb[4].mxu0  ;;  %612 = vmatprep.mubr.bf16.mxu0 %v361_v59 }
 0x133   :  { %v293_v61 = vpop.f32.mrb[5].mxu0  ;;  %613 = vmatmul.mubr.bf16.vlgmr.msra.gmra.mrb[32].mxu0 %v360_v58  ;;  %v292_v63 = vadd.f32 %v291_v60, %v1160_v48 }
 0x134   :  { %v295_v62 = vpop.f32.mrb[6].mxu0  ;;  %v294_v3 = vadd.f32 %v293_v61, %v1164_v50 }
 0x135   :  { %v296_v1 = vadd.f32 %v295_v62, %v1160_v48  ;;  %v297_v2 = vpop.f32.mrb[7].mxu0 }
 0x136   :  { %v298_v4 = vadd.f32 %v297_v2, %v1164_v50 }
 0x137   :  { %v362_v5 = vpack.c.bf16 %v296_v1, %v292_v63 }
 0x138   :  { %v363_v6 = vpack.c.bf16 %v298_v4, %v294_v3 }
 0x13a   :  { %v301_v7 = vpop.f32.mrb[8].mxu0  ;;  %622 = vmatprep.mubr.bf16.mxu0 %v363_v6 }
 0x13b   :  { %v303_v8 = vpop.f32.mrb[9].mxu0  ;;  %623 = vmatmul.mubr.bf16.gmra.mrb[36].mxu0 %v362_v5  ;;  %v302_v10 = vadd.f32 %v301_v7, %v1160_v48 }
 0x13c   :  { %v305_v9 = vpop.f32.mrb[10].mxu0  ;;  %v304_v13 = vadd.f32 %v303_v8, %v1164_v50  ;;  %v408_v8 = vld [vmem:[%s1259_s6] sm:$0x3]  ;;  %s1006_s6 = smov [#allocation8]  }
 0x13d   :  { %v306_v11 = vadd.f32 %v305_v9, %v1160_v48  ;;  %v307_v12 = vpop.f32.mrb[11].mxu0  ;;  %v1203_v9 = vrot.slane %v408_v8, %v159_v0  ;;  %s730_s18 = sshll.u32 %s1006_s6, 4  ;;  %s731_s18 = int_to_ptr.vmem [resolvable:$true] %s730_s18 }
 0x13e   :  { %v308_v14 = vadd.f32 %v307_v12, %v1164_v50  ;;  %s972_s19 = scalar_lea.vmem %s731_s18, 4096  ;;  %p977_p11 = scmp.lt.s32.totalorder %s731_s18, %s731_s18 }
 0x13f   :  { %v364_v16 = vpack.c.bf16 %v306_v11, %v302_v10  ;;  %p973_p10 = scmp.ne.s32.totalorder %s731_s18, %s972_s19  ;;  %p978_p12 = scmp.lt.s32.totalorder %s972_s19, %s972_s19 }
 0x140   :  { %v365_v17 = vpack.c.bf16 %v308_v14, %v304_v13 }
 0x141   :  { %p979_p13 = por %p978_p12, %p977_p11 }
 0x142   :  { %v311_v18 = vpop.f32.mrb[12].mxu0  ;;  %632 = vmatprep.mubr.bf16.mxu1 %v365_v17 }
 0x143   :  { %v313_v19 = vpop.f32.mrb[13].mxu0  ;;  %633 = vmatmul.mubr.bf16.vlgmr.msra.gmra.mrb[0].mxu1 %v364_v16  ;;  %v312_v21 = vadd.f32 %v311_v18, %v1160_v48  ;;  %p980_p0 = pnand %p979_p13, %p973_p10 }
 0x144   :  { %v315_v20 = vpop.f32.mrb[14].mxu0  ;;  %v314_v25 = vadd.f32 %v313_v19, %v1164_v50 }
 0x145   :  { %v316_v22 = vadd.f32 %v315_v20, %v1160_v48  ;;  %v317_v24 = vpop.f32.mrb[15].mxu0 }
 0x146   :  { %v318_v26 = vadd.f32 %v317_v24, %v1164_v50 }
 0x147   :  { %v366_v27 = vpack.c.bf16 %v316_v22, %v312_v21 }
 0x148   :  { %v367_v28 = vpack.c.bf16 %v318_v26, %v314_v25 }
 0x14a   :  { %v321_v29 = vpop.f32.mrb[16].mxu0  ;;  %642 = vmatprep.mubr.bf16.mxu1 %v367_v28 }
 0x14b   :  { %v323_v30 = vpop.f32.mrb[17].mxu0  ;;  %643 = vmatmul.mubr.bf16.gmra.mrb[4].mxu1 %v366_v27  ;;  %v322_v32 = vadd.f32 %v321_v29, %v1160_v48 }
 0x14c   :  { %v325_v31 = vpop.f32.mrb[18].mxu0  ;;  %v324_v35 = vadd.f32 %v323_v30, %v1164_v50 }
 0x14d   :  { %v326_v33 = vadd.f32 %v325_v31, %v1160_v48  ;;  %v327_v34 = vpop.f32.mrb[19].mxu0 }
 0x14e   :  { %v328_v36 = vadd.f32 %v327_v34, %v1164_v50 }
 0x14f   :  { %v368_v37 = vpack.c.bf16 %v326_v33, %v322_v32 }
 0x150   :  { %v369_v38 = vpack.c.bf16 %v328_v36, %v324_v35 }
 0x152   :  { %v331_v39 = vpop.f32.mrb[20].mxu0  ;;  %652 = vmatprep.mubr.bf16.mxu1 %v369_v38 }
 0x153   :  { %v333_v40 = vpop.f32.mrb[21].mxu0  ;;  %653 = vmatmul.mubr.bf16.gmra.mrb[8].mxu1 %v368_v37  ;;  %v332_v42 = vadd.f32 %v331_v39, %v1160_v48 }
 0x154   :  { %v335_v41 = vpop.f32.mrb[22].mxu0  ;;  %v334_v44 = vadd.f32 %v333_v40, %v1164_v50 }
 0x155   :  { %v336_v43 = vadd.f32 %v335_v41, %v1160_v48  ;;  %v337_v15 = vpop.f32.mrb[23].mxu0 }
 0x156   :  { %v338_v23 = vadd.f32 %v337_v15, %v1164_v50 }
 0x157   :  { %v370_v46 = vpack.c.bf16 %v336_v43, %v332_v42 }
 0x158   :  { %v371_v49 = vpack.c.bf16 %v338_v23, %v334_v44 }
 0x15a   :  { %v341_v51 = vpop.f32.mrb[24].mxu0  ;;  %662 = vmatprep.mubr.bf16.mxu1 %v371_v49 }
 0x15b   :  { %v343_v52 = vpop.f32.mrb[25].mxu0  ;;  %663 = vmatmul.mubr.bf16.gmra.mrb[12].mxu1 %v370_v46  ;;  %v342_v54 = vadd.f32 %v341_v51, %v1160_v48 }
 0x15c   :  { %v345_v53 = vpop.f32.mrb[26].mxu0  ;;  %v344_v57 = vadd.f32 %v343_v52, %v1164_v50 }
 0x15d   :  { %v346_v55 = vadd.f32 %v345_v53, %v1160_v48  ;;  %v347_v56 = vpop.f32.mrb[27].mxu0 }
 0x15e   :  { %v348_v58 = vadd.f32 %v347_v56, %v1164_v50 }
 0x15f   :  { %v372_v59 = vpack.c.bf16 %v346_v55, %v342_v54 }
 0x160   :  { %v373_v60 = vpack.c.bf16 %v348_v58, %v344_v57 }
 0x162   :  { %v351_v61 = vpop.f32.mrb[28].mxu0  ;;  %672 = vmatprep.mubr.bf16.mxu1 %v373_v60 }
 0x163   :  { %v353_v62 = vpop.f32.mrb[29].mxu0  ;;  %673 = vmatmul.mubr.bf16.gmra.mrb[16].mxu1 %v372_v59  ;;  %v352_v1 = vadd.f32 %v351_v61, %v1160_v48 }
 0x164   :  { %v355_v63 = vpop.f32.mrb[30].mxu0  ;;  %v354_v4 = vadd.f32 %v353_v62, %v1164_v50 }
 0x165   :  { %v356_v2 = vadd.f32 %v355_v63, %v1160_v48  ;;  %v357_v3 = vpop.f32.mrb[31].mxu0  ;;  %v1207_v48 = vrot.slane %v408_v8, %v163_v47 }
 0x166   :  { %v358_v5 = vadd.f32 %v357_v3, %v1164_v50 }
 0x167   :  { %v374_v6 = vpack.c.bf16 %v356_v2, %v352_v1 }
 0x168   :  { %v375_v7 = vpack.c.bf16 %v358_v5, %v354_v4 }
 0x16a   :  { %682 = vmatprep.mubr.bf16.mxu1 %v375_v7 }
 0x16b   :  { %683 = vmatmul.mubr.bf16.gmra.mrb[20].mxu1 %v374_v6 }
 0x206   :  { %v614_v10 = vpop.f32.mrb[32].mxu0 }
 0x207   :  { %v615_v11 = vadd.f32 %v614_v10, %v1203_v9  ;;  %v616_v50 = vpop.f32.mrb[33].mxu0 }
 0x208   :  { %v617_v12 = vadd.f32 %v616_v50, %v1207_v48  ;;  %v618_v13 = vpop.f32.mrb[34].mxu0 }
 0x209   :  { %693 = vst [vmem:[#allocation8] sm:$0xff] %v615_v11  ;;  %v619_v14 = vadd.f32 %v618_v13, %v1203_v9  ;;  %v620_v16 = vpop.f32.mrb[35].mxu0 }
 0x20a   :  { %694 = vst [vmem:[#allocation8 + $0x8] sm:$0xff] %v617_v12  ;;  %v621_v17 = vadd.f32 %v620_v16, %v1207_v48 }
 0x20b   :  { %695 = vst [vmem:[#allocation8 + $0x10] sm:$0xff] %v619_v14 }
 0x20c   :  { %696 = vst [vmem:[#allocation8 + $0x18] sm:$0xff] %v621_v17 }
 0x20e   :  { %v624_v0 = vpop.f32.mrb[36].mxu0 }
 0x20f   :  { %v625_v45 = vadd.f32 %v624_v0, %v1203_v9  ;;  %v626_v47 = vpop.f32.mrb[37].mxu0 }
 0x210   :  { %v627_v18 = vadd.f32 %v626_v47, %v1207_v48  ;;  %v628_v19 = vpop.f32.mrb[38].mxu0 }
 0x211   :  { %697 = vst [vmem:[#allocation8 + $0x20] sm:$0xff] %v625_v45  ;;  %v629_v20 = vadd.f32 %v628_v19, %v1203_v9  ;;  %v630_v21 = vpop.f32.mrb[39].mxu0 }
 0x212   :  { %698 = vst [vmem:[#allocation8 + $0x28] sm:$0xff] %v627_v18  ;;  %v631_v22 = vadd.f32 %v630_v21, %v1207_v48 }
 0x213   :  { %699 = vst [vmem:[#allocation8 + $0x30] sm:$0xff] %v629_v20 }
 0x214   :  { %700 = vst [vmem:[#allocation8 + $0x38] sm:$0xff] %v631_v22 }
 0x216   :  { %v634_v24 = vpop.f32.mrb[0].mxu1 }
 0x217   :  { %v635_v25 = vadd.f32 %v634_v24, %v1203_v9  ;;  %v636_v26 = vpop.f32.mrb[1].mxu1 }
 0x218   :  { %v637_v27 = vadd.f32 %v636_v26, %v1207_v48  ;;  %v638_v28 = vpop.f32.mrb[2].mxu1 }
 0x219   :  { %701 = vst [vmem:[#allocation8 + $0x40] sm:$0xff] %v635_v25  ;;  %v639_v29 = vadd.f32 %v638_v28, %v1203_v9  ;;  %v640_v30 = vpop.f32.mrb[3].mxu1 }
 0x21a   :  { %702 = vst [vmem:[#allocation8 + $0x48] sm:$0xff] %v637_v27  ;;  %v641_v31 = vadd.f32 %v640_v30, %v1207_v48 }
 0x21b   :  { %703 = vst [vmem:[#allocation8 + $0x50] sm:$0xff] %v639_v29 }
 0x21c   :  { %704 = vst [vmem:[#allocation8 + $0x58] sm:$0xff] %v641_v31 }
 0x21e   :  { %v644_v32 = vpop.f32.mrb[4].mxu1 }
 0x21f   :  { %v645_v33 = vadd.f32 %v644_v32, %v1203_v9  ;;  %v646_v34 = vpop.f32.mrb[5].mxu1 }
 0x220   :  { %v647_v35 = vadd.f32 %v646_v34, %v1207_v48  ;;  %v648_v36 = vpop.f32.mrb[6].mxu1 }
 0x221   :  { %705 = vst [vmem:[#allocation8 + $0x60] sm:$0xff] %v645_v33  ;;  %v649_v37 = vadd.f32 %v648_v36, %v1203_v9  ;;  %v650_v38 = vpop.f32.mrb[7].mxu1 }
 0x222   :  { %706 = vst [vmem:[#allocation8 + $0x68] sm:$0xff] %v647_v35  ;;  %v651_v39 = vadd.f32 %v650_v38, %v1207_v48 }
 0x223   :  { %707 = vst [vmem:[#allocation8 + $0x70] sm:$0xff] %v649_v37 }
 0x224   :  { %708 = vst [vmem:[#allocation8 + $0x78] sm:$0xff] %v651_v39 }
 0x226   :  { %v654_v40 = vpop.f32.mrb[8].mxu1 }
 0x227   :  { %v655_v41 = vadd.f32 %v654_v40, %v1203_v9  ;;  %v656_v42 = vpop.f32.mrb[9].mxu1 }
 0x228   :  { %v657_v43 = vadd.f32 %v656_v42, %v1207_v48  ;;  %v658_v15 = vpop.f32.mrb[10].mxu1 }
 0x229   :  { %709 = vst [vmem:[#allocation8 + $0x80] sm:$0xff] %v655_v41  ;;  %v659_v44 = vadd.f32 %v658_v15, %v1203_v9  ;;  %v660_v23 = vpop.f32.mrb[11].mxu1 }
 0x22a   :  { %710 = vst [vmem:[#allocation8 + $0x88] sm:$0xff] %v657_v43  ;;  %v661_v46 = vadd.f32 %v660_v23, %v1207_v48 }
 0x22b   :  { %711 = vst [vmem:[#allocation8 + $0x90] sm:$0xff] %v659_v44 }
 0x22c   :  { %712 = vst [vmem:[#allocation8 + $0x98] sm:$0xff] %v661_v46 }
 0x22e   :  { %v664_v49 = vpop.f32.mrb[12].mxu1 }
 0x22f   :  { %v665_v51 = vadd.f32 %v664_v49, %v1203_v9  ;;  %v666_v52 = vpop.f32.mrb[13].mxu1 }
 0x230   :  { %v667_v53 = vadd.f32 %v666_v52, %v1207_v48  ;;  %v668_v54 = vpop.f32.mrb[14].mxu1 }
 0x231   :  { %713 = vst [vmem:[#allocation8 + $0xa0] sm:$0xff] %v665_v51  ;;  %v669_v55 = vadd.f32 %v668_v54, %v1203_v9  ;;  %v670_v56 = vpop.f32.mrb[15].mxu1 }
 0x232   :  { %714 = vst [vmem:[#allocation8 + $0xa8] sm:$0xff] %v667_v53  ;;  %v671_v57 = vadd.f32 %v670_v56, %v1207_v48 }
 0x233   :  { %715 = vst [vmem:[#allocation8 + $0xb0] sm:$0xff] %v669_v55 }
 0x234   :  { %716 = vst [vmem:[#allocation8 + $0xb8] sm:$0xff] %v671_v57 }
 0x236   :  { %v674_v58 = vpop.f32.mrb[16].mxu1 }
 0x237   :  { %v675_v59 = vadd.f32 %v674_v58, %v1203_v9  ;;  %v676_v60 = vpop.f32.mrb[17].mxu1 }
 0x238   :  { %v677_v61 = vadd.f32 %v676_v60, %v1207_v48  ;;  %v678_v62 = vpop.f32.mrb[18].mxu1 }
 0x239   :  { %717 = vst [vmem:[#allocation8 + $0xc0] sm:$0xff] %v675_v59  ;;  %v679_v63 = vadd.f32 %v678_v62, %v1203_v9  ;;  %v680_v1 = vpop.f32.mrb[19].mxu1 }
 0x23a   :  { %718 = vst [vmem:[#allocation8 + $0xc8] sm:$0xff] %v677_v61  ;;  %v681_v2 = vadd.f32 %v680_v1, %v1207_v48 }
 0x23b   :  { %719 = vst [vmem:[#allocation8 + $0xd0] sm:$0xff] %v679_v63 }
 0x23c   :  { %720 = vst [vmem:[#allocation8 + $0xd8] sm:$0xff] %v681_v2 }
 0x23e   :  { %v684_v3 = vpop.f32.mrb[20].mxu1 }
 0x23f   :  { %v685_v4 = vadd.f32 %v684_v3, %v1203_v9  ;;  %v686_v5 = vpop.f32.mrb[21].mxu1 }
 0x240   :  { %v687_v6 = vadd.f32 %v686_v5, %v1207_v48  ;;  %v688_v7 = vpop.f32.mrb[22].mxu1 }
 0x241   :  { %721 = vst [vmem:[#allocation8 + $0xe0] sm:$0xff] %v685_v4  ;;  %v689_v8 = vadd.f32 %v688_v7, %v1203_v9  ;;  %v690_v10 = vpop.f32.mrb[23].mxu1 }
 0x242   :  { %722 = vst [vmem:[#allocation8 + $0xe8] sm:$0xff] %v687_v6  ;;  %v691_v11 = vadd.f32 %v690_v10, %v1207_v48 }
 0x243   :  { %723 = vst [vmem:[#allocation8 + $0xf0] sm:$0xff] %v689_v8 }
 0x244   :  { %724 = vst [vmem:[#allocation8 + $0xf8] sm:$0xff] %v691_v11 }
 0x245   :  { %983 = shalt.err (!%p980_p0)
}
 0x246   :  { %s984_s22 = scalar_lea.hbm %s1260_s7, 4096 }
 0x247   :  { %p985_p1 = scmp.ne.s32.totalorder %s1260_s7, %s984_s22  ;;  %p988_p2 = scmp.lt.u32.totalorder %s984_s22, %s1260_s7 }
 0x249   :  { %p990_p3 = pnand %p988_p2, %p985_p1 }
 0x24b   :  { %993 = shalt.err (!%p990_p3)
}
 0x24c   :  { %s1007_s26 = smov 256   ;;  %s1008_s28 = smov 16  }
 0x24d   :  { %736 = dma.vmem_to_hbm [thread:$0]  %s731_s18, 4096, %s1260_s7, [#allocation4], %s1007_s26, %s1007_s26, %s1008_s28  }
 0x24e   :  { %998 = dma.done.wait [#allocation4], 4096  }
 0x24f   :  { %999 = vsyncadd [#allocation4], 4294963200 }
 0x250   :  { %740 = vsyncpa [#allocation3], 1 }
 0x251   :  { %741 = vsyncpa [#allocation6], 1 }
 0x252   :  { %742 = vsyncpa [#allocation4], 1 }

</bundles_post_ra>
